<compile_context>
chip_gen: v7x
topology: tpu7x:2x2x1
jax: 0.10.0
libtpu: 0.0.40
codegen_flags: <defaults>
</compile_context>

<pallas_src>
import math
import functools

import jax
import jax.numpy as jnp
from jax.experimental import pallas as pl
from jax.experimental.pallas import tpu as pltpu

EPS = 1e-5
_MB = 1024 * 1024
_MAX_TILE_ROWS = 16384


# ----------------------------------------------------------------------------
# Generation-aware budgets
# ----------------------------------------------------------------------------
def _chip_config():
    kind = ""
    try:
        kind = jax.devices()[0].device_kind.lower()
    except Exception:
        pass
    if "v7" in kind:
        # 64 MiB physical VMEM, 2 TensorCores/chip, 3.2 TB/s HBM:
        # prefer the tiled ("parallel") path earlier and keep tiles modest.
        return dict(resident_max_bytes=8 * _MB, target_tile_bytes=3 * _MB,
                    vmem_limit_bytes=48 * _MB)
    if ("v5 lite" in kind) or ("v5e" in kind) or ("v5lite" in kind):
        # 128 MiB physical VMEM but only a 16 MiB default scoped limit:
        # raise the limit explicitly so bigger tiles / resident slabs are legal.
        return dict(resident_max_bytes=16 * _MB, target_tile_bytes=4 * _MB,
                    vmem_limit_bytes=96 * _MB)
    # v6e-ish default: 128 MiB physical VMEM, 32 MiB default scoped limit.
    return dict(resident_max_bytes=20 * _MB, target_tile_bytes=6 * _MB,
                vmem_limit_bytes=100 * _MB)


def _sublane(dtype):
    # sublane-packing multiple per dtype width (f32:8, bf16:16, int8/fp8:32)
    return {4: 8, 2: 16, 1: 32}.get(jnp.dtype(dtype).itemsize, 8)


# ----------------------------------------------------------------------------
# Kernels
# ----------------------------------------------------------------------------
def _bn_resident_kernel(x_ref, w_ref, b_ref, o_ref):
    """Whole (N, E) array resident in VMEM: single-pass sum/sumsq + fused affine."""
    x = x_ref[...].astype(jnp.float32)
    inv_n = 1.0 / x.shape[0]
    s = jnp.sum(x, axis=0, keepdims=True)            # (1, E)
    ss = jnp.sum(x * x, axis=0, keepdims=True)       # (1, E)
    mean = s * inv_n
    var = jnp.maximum(ss * inv_n - mean * mean, 0.0)
    inv = jax.lax.rsqrt(var + EPS)
    scale = inv * w_ref[...].astype(jnp.float32)     # (1, E)
    shift = b_ref[...].astype(jnp.float32) - mean * scale
    o_ref[...] = (x * scale + shift).astype(o_ref.dtype)


def _bn_stats_kernel(x_ref, o_ref, *, tile_rows, n_valid, ragged):
    """Per-row-tile partial column sums / sums-of-squares.

    Masking is only emitted when the grid has a ragged last tile, and only
    executed on that last tile.  Partial stats are stored directly (no concat).
    """
    def emit(x):                                          # x: (tr, f) f32
        o_ref[0:1, 0:1, :] = jnp.sum(x, axis=0, keepdims=True)[None]
        o_ref[0:1, 1:2, :] = jnp.sum(x * x, axis=0, keepdims=True)[None]

    if ragged:
        i = pl.program_id(0)
        last = pl.num_programs(0) - 1

        @pl.when(i == last)
        def _():
            x = x_ref[...].astype(jnp.float32)
            row = jax.lax.broadcasted_iota(jnp.int32, x.shape, 0) + i * tile_rows
            emit(jnp.where(row < n_valid, x, 0.0))

        @pl.when(i != last)
        def _():
            emit(x_ref[...].astype(jnp.float32))
    else:
        emit(x_ref[...].astype(jnp.float32))


def _bn_norm_kernel(x_ref, scale_ref, shift_ref, o_ref):
    """y = x * scale + shift (mean/var/weight/bias folded into scale/shift).
    Rank-agnostic (used for both the 2-D batch path and the 3-D instance path)."""
    x = x_ref[...].astype(jnp.float32)
    o_ref[...] = (x * scale_ref[...] + shift_ref[...]).astype(o_ref.dtype)


def _instnorm_kernel(x_ref, w_ref, b_ref, o_ref):
    """(TB, S, E) block: stats over S per (b, e), single pass, fused scale/shift."""
    x = x_ref[...].astype(jnp.float32)                    # (TB, S, E)
    inv_s = 1.0 / x.shape[1]
    mean = jnp.sum(x, axis=1, keepdims=True) * inv_s      # (TB, 1, E)
    msq = jnp.sum(x * x, axis=1, keepdims=True) * inv_s
    var = jnp.maximum(msq - mean * mean, 0.0)
    inv = jax.lax.rsqrt(var + EPS)
    scale = inv * w_ref[...].astype(jnp.float32)          # (TB, 1, E)
    shift = b_ref[...].astype(jnp.float32) - mean * scale
    o_ref[...] = (x * scale + shift).astype(o_ref.dtype)


def _inst_stats_kernel(x_ref, o_ref, *, tile_s, s_valid, ragged):
    """Partial sum / sumsq over an S-tile for one batch element."""
    def emit(x):                                          # x: (1, ts, E) f32
        o_ref[0:1, 0:1, 0:1, :] = jnp.sum(x, axis=1, keepdims=True)[:, None]
        o_ref[0:1, 0:1, 1:2, :] = jnp.sum(x * x, axis=1, keepdims=True)[:, None]

    if ragged:
        si = pl.program_id(1)
        last = pl.num_programs(1) - 1

        @pl.when(si == last)
        def _():
            x = x_ref[...].astype(jnp.float32)
            pos = jax.lax.broadcasted_iota(jnp.int32, x.shape, 1) + si * tile_s
            emit(jnp.where(pos < s_valid, x, 0.0))

        @pl.when(si != last)
        def _():
            emit(x_ref[...].astype(jnp.float32))
    else:
        emit(x_ref[...].astype(jnp.float32))


# ----------------------------------------------------------------------------
# Wrappers
# ----------------------------------------------------------------------------
def _batchnorm_resident(x_flat, weight, bias, cfg):
    N, E = x_flat.shape
    w2 = weight.reshape(1, E)
    b2 = bias.reshape(1, E)
    return pl.pallas_call(
        _bn_resident_kernel,
        out_shape=jax.ShapeDtypeStruct((N, E), x_flat.dtype),
        grid_spec=pltpu.PrefetchScalarGridSpec(
            num_scalar_prefetch=0,
            grid=(1,),
            in_specs=[
                # grid=(1,): nothing to pipeline, so single-buffer the big slabs
                pl.BlockSpec((N, E), lambda i: (0, 0), pipeline_mode=pl.Buffered(1)),
                pl.BlockSpec((1, E), lambda i: (0, 0)),
                pl.BlockSpec((1, E), lambda i: (0, 0)),
            ],
            out_specs=pl.BlockSpec((N, E), lambda i: (0, 0),
                                   pipeline_mode=pl.Buffered(1)),
        ),
        compiler_params=pltpu.CompilerParams(
            dimension_semantics=("arbitrary",),
            vmem_limit_bytes=cfg["vmem_limit_bytes"]),
    )(x_flat, w2, b2)


def _batchnorm_tiled(x_flat, weight, bias, cfg, tile_rows=None):
    N, E = x_flat.shape
    itemsize = jnp.dtype(x_flat.dtype).itemsize
    sub = _sublane(x_flat.dtype)

    # --- unconditional lane packing ------------------------------------------
    # View (N, E) as (Np/g, g*E) so both kernels see a lane-dense last dim
    # (multiple of 128 -> unmasked vld/vst).  If N is not a multiple of the
    # packing factor g, pad N with zero rows; zeros are neutral for sum/sumsq
    # (mean/var still divide by the true N) and the wrapper slices them off.
    g = 1
    if E % 128 != 0:
        g = 128 // math.gcd(E, 128)
    n_pad = (-N) % g
    if n_pad:
        x_flat = jnp.pad(x_flat, ((0, n_pad), (0, 0)))
    Np = N + n_pad
    n2 = Np // g
    f = g * E
    x2 = x_flat.reshape(n2, f)

    # --- dtype-aware tile sizing ----------------------------------------------
    if tile_rows is None:
        tr = (cfg["target_tile_bytes"] // max(1, f * itemsize)) // sub * sub
        tr = max(sub, min(_MAX_TILE_ROWS, tr))
    else:
        tr = max(sub, (int(tile_rows) + sub - 1) // sub * sub)
    if tr >= n2:
        tr = n2                         # single full block (always layout-legal)
    num_tiles = pl.cdiv(n2, tr)
    ragged = (n2 % tr) != 0

    mosaic = pltpu.CompilerParams(
        dimension_semantics=("parallel",),
        vmem_limit_bytes=cfg["vmem_limit_bytes"])

    # ---- phase 1: per-tile partial sum / sumsq -------------------------------
    partial = pl.pallas_call(
        functools.partial(_bn_stats_kernel, tile_rows=tr, n_valid=n2, ragged=ragged),
        out_shape=jax.ShapeDtypeStruct((num_tiles, 2, f), jnp.float32),
        grid_spec=pltpu.PrefetchScalarGridSpec(
            num_scalar_prefetch=0,
            grid=(num_tiles,),
            in_specs=[pl.BlockSpec((tr, f), lambda i: (i, 0))],
            out_specs=pl.BlockSpec((1, 2, f), lambda i: (i, 0, 0)),
        ),
        compiler_params=mosaic,
    )(x2)

    # Fold the g lane replicas and the tile axis back to per-feature stats
    # (tiny (num_tiles, 2, g, E) reduction done by XLA).
    sums = partial.reshape(num_tiles, 2, g, E).sum(axis=(0, 2))   # (2, E) f32
    mean = sums[0] / N                                            # true row count
    var = jnp.maximum(sums[1] / N - mean * mean, 0.0)
    inv = jax.lax.rsqrt(var + EPS)
    scale = inv * weight.astype(jnp.float32)
    shift = bias.astype(jnp.float32) - mean * scale
    scale_big = jnp.tile(scale, g).reshape(1, f)
    shift_big = jnp.tile(shift, g).reshape(1, f)

    # ---- phase 2: normalize (2 VPU ops / element, lane-dense stores) ---------
    out2 = pl.pallas_call(
        _bn_norm_kernel,
        out_shape=jax.ShapeDtypeStruct((n2, f), x_flat.dtype),
        grid_spec=pltpu.PrefetchScalarGridSpec(
            num_scalar_prefetch=0,
            grid=(num_tiles,),
            in_specs=[
                pl.BlockSpec((tr, f), lambda i: (i, 0)),
                pl.BlockSpec((1, f), lambda i: (0, 0)),
                pl.BlockSpec((1, f), lambda i: (0, 0)),
            ],
            out_specs=pl.BlockSpec((tr, f), lambda i: (i, 0)),
        ),
        compiler_params=mosaic,
    )(x2, scale_big, shift_big)

    out = out2.reshape(Np, E)
    if n_pad:
        out = out[:N]
    return out


def _instancenorm(x, weight, bias, cfg, batch_tile=None, seq_tile=None,
                  force_tiled=False):
    B, S, E = x.shape
    itemsize = jnp.dtype(x.dtype).itemsize
    slab_bytes = S * E * itemsize

    # TODO(synk): for E not a multiple of 128 (e.g. 96) the per-block stores here
    # are lane-masked; padding E to 128 is only worth it if amortized across many
    # layers, so it is left to the caller.

    # VMEM guard: single-pass path needs ~4 * tb * slab_bytes (in+out, 2 buffers).
    single_pass_ok = (4 * slab_bytes) <= (cfg["vmem_limit_bytes"] // 2)

    if single_pass_ok and not force_tiled:
        w3 = weight.reshape(1, 1, E)
        b3 = bias.reshape(1, 1, E)
        if batch_tile is None:
            tb = max(1, min(B, cfg["target_tile_bytes"] // max(1, slab_bytes)))
        else:
            tb = max(1, min(B, int(batch_tile)))
        num_tiles = pl.cdiv(B, tb)
        return pl.pallas_call(
            _instnorm_kernel,
            out_shape=jax.ShapeDtypeStruct((B, S, E), x.dtype),
            grid_spec=pltpu.PrefetchScalarGridSpec(
                num_scalar_prefetch=0,
                grid=(num_tiles,),
                in_specs=[
                    pl.BlockSpec((tb, S, E), lambda i: (i, 0, 0)),
                    pl.BlockSpec((1, 1, E), lambda i: (0, 0, 0)),
                    pl.BlockSpec((1, 1, E), lambda i: (0, 0, 0)),
                ],
                out_specs=pl.BlockSpec((tb, S, E), lambda i: (i, 0, 0)),
            ),
            compiler_params=pltpu.CompilerParams(
                dimension_semantics=("parallel",),
                vmem_limit_bytes=cfg["vmem_limit_bytes"]),
        )(x, w3, b3)

    # ---- S-tiled two-phase path (large S*E slabs; VMEM guard, esp. v7x) ------
    sub = _sublane(x.dtype)
    if seq_tile is None:
        ts = (cfg["target_tile_bytes"] // max(1, E * itemsize)) // sub * sub
        ts = max(sub, ts)
    else:
        ts = max(sub, (int(seq_tile) + sub - 1) // sub * sub)
    if ts >= S:
        ts = S
    num_s = pl.cdiv(S, ts)
    ragged = (S % ts) != 0

    mosaic2 = pltpu.CompilerParams(
        dimension_semantics=("parallel", "parallel"),
        vmem_limit_bytes=cfg["vmem_limit_bytes"])

    partial = pl.pallas_call(
        functools.partial(_inst_stats_kernel, tile_s=ts, s_valid=S, ragged=ragged),
        out_shape=jax.ShapeDtypeStruct((B, num_s, 2, E), jnp.float32),
        grid_spec=pltpu.PrefetchScalarGridSpec(
            num_scalar_prefetch=0,
            grid=(B, num_s),
            in_specs=[pl.BlockSpec((1, ts, E), lambda b, s: (b, s, 0))],
            out_specs=pl.BlockSpec((1, 1, 2, E), lambda b, s: (b, s, 0, 0)),
        ),
        compiler_params=mosaic2,
    )(x)

    sums = partial.sum(axis=1)                       # (B, 2, E) f32
    mean = sums[:, 0] / S                            # (B, E)
    var = jnp.maximum(sums[:, 1] / S - mean * mean, 0.0)
    inv = jax.lax.rsqrt(var + EPS)
    scale_be = inv * weight.astype(jnp.float32)[None, :]
    shift_be = bias.astype(jnp.float32)[None, :] - mean * scale_be
    scale = scale_be.reshape(B, 1, E)
    shift = shift_be.reshape(B, 1, E)

    return pl.pallas_call(
        _bn_norm_kernel,
        out_shape=jax.ShapeDtypeStruct((B, S, E), x.dtype),
        grid_spec=pltpu.PrefetchScalarGridSpec(
            num_scalar_prefetch=0,
            grid=(B, num_s),
            in_specs=[
                pl.BlockSpec((1, ts, E), lambda b, s: (b, s, 0)),
                pl.BlockSpec((1, 1, E), lambda b, s: (b, 0, 0)),
                pl.BlockSpec((1, 1, E), lambda b, s: (b, 0, 0)),
            ],
            out_specs=pl.BlockSpec((1, ts, E), lambda b, s: (b, s, 0)),
        ),
        compiler_params=mosaic2,
    )(x, scale, shift)


def normalization_forward(x, weight, bias, normalization: str, *,
                          force_tiled_batch: bool = False,
                          batch_tile_rows=None,
                          instance_batch_tile=None,
                          instance_seq_tile=None,
                          force_tiled_instance: bool = False):
    """x: (B, S, E); weight/bias: (E,)."""
    B, S, E = x.shape
    cfg = _chip_config()
    if normalization == "batch":
        x_flat = x.reshape(B * S, E)
        x_bytes = (B * S) * E * jnp.dtype(x.dtype).itemsize
        if force_tiled_batch or x_bytes > cfg["resident_max_bytes"]:
            out = _batchnorm_tiled(x_flat, weight, bias, cfg, tile_rows=batch_tile_rows)
        else:
            out = _batchnorm_resident(x_flat, weight, bias, cfg)
        return out.reshape(B, S, E)
    elif normalization == "instance":
        # Module constructs InstanceNorm1d(embed_dim, affine=True) -> apply weight/bias.
        return _instancenorm(x, weight, bias, cfg,
                             batch_tile=instance_batch_tile,
                             seq_tile=instance_seq_tile,
                             force_tiled=force_tiled_instance)
    else:
        # Unknown normalizer -> identity (matches the assert branch in PyTorch)
        return x


# ----------------------------------------------------------------------------
# Pure-JAX reference (PyTorch training-mode semantics)
# ----------------------------------------------------------------------------
def _reference(x, weight, bias, normalization):
    x32 = x.astype(jnp.float32)
    if normalization == "batch":
        B, S, E = x.shape
        xf = x32.reshape(B * S, E)
        mean = xf.mean(axis=0, keepdims=True)
        var = ((xf - mean) ** 2).mean(axis=0, keepdims=True)
        y = (xf - mean) / jnp.sqrt(var + EPS) * weight + bias
        return y.reshape(B, S, E).astype(x.dtype)
    else:
        mean = x32.mean(axis=1, keepdims=True)
        var = ((x32 - mean) ** 2).mean(axis=1, keepdims=True)
        y = (x32 - mean) / jnp.sqrt(var + EPS) * weight[None, None, :] + bias[None, None, :]
        return y.astype(x.dtype)


# ----------------------------------------------------------------------------
# Main
# ----------------------------------------------------------------------------
if __name__ == "__main__":
    key = jax.random.PRNGKey(0)
    ok = True

    shapes = [
        (2, 8, 32),     # small, module-consistent
        (4, 201, 96),   # ragged tiles, E % 128 != 0 (packed g=4, no padding needed)
        (3, 67, 96),    # N % g != 0 -> exercises the zero-row padding path
    ]
    for (B, S, E) in shapes:
        key, kx, kw, kb = jax.random.split(key, 4)
        x = jax.random.normal(kx, (B, S, E), dtype=jnp.float32)

        # Affine params matching init_parameters(): U(-1/sqrt(E), 1/sqrt(E))
        stdv = 1.0 / math.sqrt(E)
        weight = jax.random.uniform(kw, (E,), minval=-stdv, maxval=stdv, dtype=jnp.float32)
        bias = jax.random.uniform(kb, (E,), minval=-stdv, maxval=stdv, dtype=jnp.float32)

        cases = [
            ("batch-resident", dict(normalization="batch")),
            ("batch-tiled", dict(normalization="batch", force_tiled_batch=True)),
            ("batch-tiled-small-tile", dict(normalization="batch",
                                            force_tiled_batch=True,
                                            batch_tile_rows=8)),
            ("instance", dict(normalization="instance")),
            ("instance-partial-block", dict(normalization="instance",
                                            instance_batch_tile=3)),
            ("instance-s-tiled", dict(normalization="instance",
                                      force_tiled_instance=True,
                                      instance_seq_tile=64)),
        ]
        for name, kwargs in cases:
            mode = kwargs["normalization"]
            out = normalization_forward(x, weight, bias, **kwargs)
            out = jax.block_until_ready(out)
            ref = _reference(x, weight, bias, mode)
            if not jnp.allclose(out, ref, atol=2e-5, rtol=2e-5):
                ok = False
                err = float(jnp.max(jnp.abs(out.astype(jnp.float32)
                                            - ref.astype(jnp.float32))))
                print(f"MISMATCH shape=({B},{S},{E}) case={name}: max err {err}")

    if ok:
        print("KERNEL_OK")
</pallas_src>

<mosaic_0001>
module attributes {stable_mosaic.version = 11 : i64} {
  func.func @_bn_resident_kernel(%arg0: i32, %arg1: memref<16x32xf32, #tpu.memory_space<vmem>>, %arg2: memref<1x32xf32, #tpu.memory_space<vmem>>, %arg3: memref<1x32xf32, #tpu.memory_space<vmem>>, %arg4: memref<16x32xf32, #tpu.memory_space<vmem>>) attributes {dimension_semantics = [#tpu.dimension_semantics<arbitrary>], iteration_bounds = array<i64: 1>, scalar_prefetch = 0 : i64, scratch_operands = 0 : i64, tpu.core_type = #tpu.core_type<tc>, window_params = [{pipeline_mode = #tpu.pipeline_mode<synchronous>, transform_indices = @transform_0, window_bounds = array<i64: 16, 32>}, {pipeline_mode = #tpu.pipeline_mode<synchronous>, transform_indices = @transform_1, window_bounds = array<i64: 1, 32>}, {pipeline_mode = #tpu.pipeline_mode<synchronous>, transform_indices = @transform_2, window_bounds = array<i64: 1, 32>}, {pipeline_mode = #tpu.pipeline_mode<synchronous>, transform_indices = @transform_3, window_bounds = array<i64: 16, 32>}]} {
    %c0 = arith.constant 0 : index
    %c0_0 = arith.constant 0 : index
    %0 = vector.load %arg1[%c0, %c0_0] : memref<16x32xf32, #tpu.memory_space<vmem>>, vector<16x32xf32>
    %cst = arith.constant dense<0.000000e+00> : vector<32xf32>
    %1 = vector.multi_reduction <add>, %0, %cst [0] : vector<16x32xf32> to vector<32xf32>
    %2 = vector.shape_cast %1 : vector<32xf32> to vector<1x32xf32>
    %3 = arith.mulf %0, %0 : vector<16x32xf32>
    %cst_1 = arith.constant dense<0.000000e+00> : vector<32xf32>
    %4 = vector.multi_reduction <add>, %3, %cst_1 [0] : vector<16x32xf32> to vector<32xf32>
    %5 = vector.shape_cast %4 : vector<32xf32> to vector<1x32xf32>
    %cst_2 = arith.constant 6.250000e-02 : f32
    %6 = vector.broadcast %cst_2 : f32 to vector<1x32xf32>
    %7 = arith.mulf %2, %6 : vector<1x32xf32>
    %cst_3 = arith.constant 6.250000e-02 : f32
    %8 = vector.broadcast %cst_3 : f32 to vector<1x32xf32>
    %9 = arith.mulf %5, %8 : vector<1x32xf32>
    %10 = arith.mulf %7, %7 : vector<1x32xf32>
    %11 = arith.subf %9, %10 : vector<1x32xf32>
    %cst_4 = arith.constant 0.000000e+00 : f32
    %12 = vector.broadcast %cst_4 : f32 to vector<1x32xf32>
    %13 = arith.maximumf %11, %12 : vector<1x32xf32>
    %cst_5 = arith.constant 9.99999974E-6 : f32
    %14 = vector.broadcast %cst_5 : f32 to vector<1x32xf32>
    %15 = arith.addf %13, %14 : vector<1x32xf32>
    %16 = math.rsqrt %15 : vector<1x32xf32>
    %c0_6 = arith.constant 0 : index
    %c0_7 = arith.constant 0 : index
    %17 = vector.load %arg2[%c0_6, %c0_7] : memref<1x32xf32, #tpu.memory_space<vmem>>, vector<1x32xf32>
    %18 = arith.mulf %16, %17 : vector<1x32xf32>
    %c0_8 = arith.constant 0 : index
    %c0_9 = arith.constant 0 : index
    %19 = vector.load %arg3[%c0_8, %c0_9] : memref<1x32xf32, #tpu.memory_space<vmem>>, vector<1x32xf32>
    %20 = arith.mulf %7, %18 : vector<1x32xf32>
    %21 = arith.subf %19, %20 : vector<1x32xf32>
    %22 = vector.broadcast %18 : vector<1x32xf32> to vector<16x32xf32>
    %23 = arith.mulf %0, %22 : vector<16x32xf32>
    %24 = vector.broadcast %21 : vector<1x32xf32> to vector<16x32xf32>
    %25 = arith.addf %23, %24 : vector<16x32xf32>
    %c0_10 = arith.constant 0 : index
    %c0_11 = arith.constant 0 : index
    %26 = vector.load %arg4[%c0_10, %c0_11] : memref<16x32xf32, #tpu.memory_space<vmem>>, vector<16x32xf32>
    tpu.vector_store %arg4[%c0_10, %c0_11], %25 {strides = array<i32>} : memref<16x32xf32, #tpu.memory_space<vmem>>, vector<16x32xf32>,
    return
  }
  func.func @transform_0(%arg0: i32) -> (i32, i32) {
    %c0_i32 = arith.constant 0 : i32
    %c0_i32_0 = arith.constant 0 : i32
    %c0_i32_1 = arith.constant 0 : i32
    return %c0_i32, %c0_i32_0 : i32, i32
  }
  func.func @transform_1(%arg0: i32) -> (i32, i32) {
    %c0_i32 = arith.constant 0 : i32
    %c0_i32_0 = arith.constant 0 : i32
    %c0_i32_1 = arith.constant 0 : i32
    return %c0_i32, %c0_i32_0 : i32, i32
  }
  func.func @transform_2(%arg0: i32) -> (i32, i32) {
    %c0_i32 = arith.constant 0 : i32
    %c0_i32_0 = arith.constant 0 : i32
    %c0_i32_1 = arith.constant 0 : i32
    return %c0_i32, %c0_i32_0 : i32, i32
  }
  func.func @transform_3(%arg0: i32) -> (i32, i32) {
    %c0_i32 = arith.constant 0 : i32
    %c0_i32_0 = arith.constant 0 : i32
    %c0_i32_1 = arith.constant 0 : i32
    return %c0_i32, %c0_i32_0 : i32, i32
  }
}

</mosaic_0001>

<bundles_post_ra>
// kernel: tpu_custom_call.1
= control target key start
LH: loop header
LB: loop body
LE: loop exit
PB: predicated region body
PF: predicated region fallthrough
CT: control target
= control target key end

     0   :  { %8 = vsyncpa [#allocation3], 0  ;;  %s316_s0 = inlined_call_operand.hbm [shape: f32[16,32], index: 0, kind: input, shape index: {}]   ;;  %s317_s1 = inlined_call_operand.hbm [shape: f32[1,32], index: 1, kind: input, shape index: {}]   ;;  %s318_s2 = inlined_call_operand.hbm [shape: f32[1,32], index: 2, kind: input, shape index: {}]   ;;  %s319_s3 = inlined_call_operand.hbm [shape: f32[16,32], index: 3, kind: output, shape index: {}]  }
   0x1   :  { %9 = vsyncpa [#allocation6], 0 }
   0x2   :  { %10 = vsyncpa [#allocation4], 0  ;;  %s223_s12 = smov [#allocation5]   ;;  %s224_s14 = smov [#allocation2]  }
   0x3   :  { %s29_s13 = sshll.u32 %s223_s12, 4  ;;  %s16_s15 = sshll.u32 %s224_s14, 4  ;;  %s30_s13 = int_to_ptr.vmem [resolvable:$true] %s29_s13  ;;  %s249_s15 = int_to_ptr.vmem [resolvable:$true] %s16_s15 }
   0x4   :  { %s129_s18 = scalar_lea.hbm %s317_s1, 16 }
   0x5   :  { %p130_p0 = scmp.ne.s32.totalorder %s317_s1, %s129_s18  ;;  %p133_p1 = scmp.lt.u32.totalorder %s129_s18, %s317_s1 }
   0x7   :  { %p135_p2 = pnand %p133_p1, %p130_p0 }
   0x9   :  { %138 = shalt.err (!%p135_p2)
}
   0xa   :  { %s139_s23 = scalar_lea.vmem %s30_s13, 16  ;;  %s143_s24 = scalar_lea.vmem %s30_s13, 32 }
   0xb   :  { %p140_p3 = scmp.ne.s32.totalorder %s30_s13, %s139_s23  ;;  %p144_p4 = scmp.lt.s32.totalorder %s30_s13, %s30_s13 }
   0xc   :  { %p145_p5 = scmp.lt.s32.totalorder %s143_s24, %s139_s23 }
   0xe   :  { %p146_p6 = por %p145_p5, %p144_p4 }
  0x10   :  { %p147_p7 = pnand %p146_p6, %p140_p3 }
  0x12   :  { %150 = shalt.err (!%p147_p7)
}
  0x13   :  { %32 = dma.hbm_to_vmem [thread:$0]  %s317_s1, 16, %s30_s13, [#allocation6]  }
  0x14   :  { %s151_s29 = scalar_lea.hbm %s316_s0, 256 }
  0x15   :  { %p152_p8 = scmp.ne.s32.totalorder %s316_s0, %s151_s29  ;;  %p155_p9 = scmp.lt.u32.totalorder %s151_s29, %s316_s0 }
  0x17   :  { %p157_p10 = pnand %p155_p9, %p152_p8 }
  0x19   :  { %160 = shalt.err (!%p157_p10)
}
  0x1a   :  { %s161_s7 = scalar_lea.vmem %s249_s15, 256  ;;  %p166_p12 = scmp.lt.s32.totalorder %s249_s15, %s249_s15 }
  0x1b   :  { %p162_p11 = scmp.ne.s32.totalorder %s249_s15, %s161_s7  ;;  %p167_p13 = scmp.lt.s32.totalorder %s161_s7, %s161_s7 }
  0x1d   :  { %p168_p0 = por %p167_p13, %p166_p12 }
  0x1f   :  { %p169_p1 = pnand %p168_p0, %p162_p11 }
  0x21   :  { %172 = shalt.err (!%p169_p1)
}
  0x22   :  { %s225_s1 = smov 128   ;;  %s226_s8 = smov 8  }
  0x23   :  { %22 = dma.hbm_to_vmem [thread:$0]  %s316_s0, 256, %s249_s15, [#allocation3], %s225_s1, %s225_s1, %s226_s8  }
  0x24   :  { %s227_s11 = smov [#allocation7]   ;;  %s173_s16 = scalar_lea.hbm %s318_s2, 16 }
  0x25   :  { %s39_s12 = sshll.u32 %s227_s11, 4  ;;  %p174_p2 = scmp.ne.s32.totalorder %s318_s2, %s173_s16  ;;  %s40_s12 = int_to_ptr.vmem [resolvable:$true] %s39_s12 }
  0x26   :  { %p177_p3 = scmp.lt.u32.totalorder %s173_s16, %s318_s2 }
  0x28   :  { %p179_p4 = pnand %p177_p3, %p174_p2 }
  0x2a   :  { %182 = shalt.err (!%p179_p4)
}
  0x2b   :  { %s183_s21 = scalar_lea.vmem %s40_s12, 16  ;;  %s187_s0 = scalar_lea.vmem %s40_s12, 32 }
  0x2c   :  { %p184_p5 = scmp.ne.s32.totalorder %s40_s12, %s183_s21  ;;  %p188_p6 = scmp.lt.s32.totalorder %s40_s12, %s40_s12 }
  0x2d   :  { %p189_p7 = scmp.lt.s32.totalorder %s187_s0, %s183_s21 }
  0x2f   :  { %p190_p8 = por %p189_p7, %p188_p6 }
  0x31   :  { %p191_p9 = pnand %p190_p8, %p184_p5 }
  0x33   :  { %194 = shalt.err (!%p191_p9)
}
  0x34   :  { %42 = dma.hbm_to_vmem [thread:$0]  %s318_s2, 16, %s40_s12, [#allocation6]  }
  0x35   :  { %217 = dma.done.wait [#allocation3], 256  }
  0x36   :  { %218 = vsyncadd [#allocation3], 4294967040 }
  0x37   :  { %219 = dma.done.wait [#allocation6], 32  }
  0x38   :  { %220 = vsyncadd [#allocation6], 4294967264  ;;  %vm54_vm0 = vcmask 261120   ;;  %v52_v0 = vld [vmem:[#allocation2] sm:$0xff]  ;;  %v53_v1 = vld [vmem:[#allocation2 + $0x8] sm:$0xff]  ;;  %v87_v28 = vlaneseq  ;;  %s228_s2 = smov [#allocation8]  }
  0x39   :  { %v55_v2 = vsel %vm54_vm0, %v52_v0, 0.0  ;;  %v56_v3 = vsel %vm54_vm0, %v53_v1, 0.0  ;;  %v64_v4 = vmul.f32 %v52_v0, %v52_v0  ;;  %v65_v5 = vmul.f32 %v53_v1, %v53_v1  ;;  %v82_v30 = vld [vmem:[#allocation5] sm:$0x1]  ;;  %v84_v34 = vld [vmem:[#allocation7] sm:$0x1] }
  0x3a   :  { %v57_v6 = vadd.f32 %v56_v3, %v55_v2  ;;  %v88_v29 = vshrl.u32 %v87_v28, 7  ;;  %s108_s23 = sshll.u32 %s228_s2, 4  ;;  %s109_s23 = int_to_ptr.vmem [resolvable:$true] %s108_s23 }
  0x3b   :  { %v66_v7 = vsel %vm54_vm0, %v64_v4, 0.0  ;;  %v67_v8 = vsel %vm54_vm0, %v65_v5, 0.0  ;;  %s195_s24 = scalar_lea.vmem %s109_s23, 256  ;;  %p200_p11 = scmp.lt.s32.totalorder %s109_s23, %s109_s23 }
  0x3c   :  { %v58_v9 = vrot.slane %v57_v6, 4  ;;  %v68_v10 = vadd.f32 %v67_v8, %v66_v7  ;;  %v89_v31 = vsub.s32 0, %v88_v29  ;;  %p196_p10 = scmp.ne.s32.totalorder %s109_s23, %s195_s24  ;;  %p201_p12 = scmp.lt.s32.totalorder %s195_s24, %s195_s24 }
  0x3e   :  { %v59_v11 = vadd.f32 %v58_v9, %v57_v6  ;;  %v69_v12 = vrot.slane %v68_v10, 4  ;;  %p202_p13 = por %p201_p12, %p200_p11 }
  0x40   :  { %v60_v13 = vrot.slane %v59_v11, 2  ;;  %v70_v14 = vadd.f32 %v69_v12, %v68_v10  ;;  %p203_p0 = pnand %p202_p13, %p196_p10 }
  0x42   :  { %v61_v15 = vadd.f32 %v60_v13, %v59_v11  ;;  %v71_v16 = vrot.slane %v70_v14, 2 }
  0x44   :  { %v62_v17 = vrot.slane %v61_v15, 1  ;;  %v72_v18 = vadd.f32 %v71_v16, %v70_v14 }
  0x46   :  { %v63_v19 = vadd.f32 %v62_v17, %v61_v15  ;;  %v73_v20 = vrot.slane %v72_v18, 1 }
  0x48   :  { %v74_v21 = vadd.f32 %v73_v20, %v72_v18  ;;  %v75_v22 = vmul.f32 0.0625, %v63_v19 }
  0x4a   :  { %v76_v23 = vmul.f32 0.0625, %v74_v21  ;;  %v77_v24 = vmul.f32 %v75_v22, %v75_v22 }
  0x4c   :  { %v78_v25 = vsub.f32 %v76_v23, %v77_v24 }
  0x4e   :  { %v79_v26 = vmax.f32 %v78_v25, 0.0 }
  0x50   :  { %v80_v27 = vadd.f32 1e-05, %v79_v26 }
  0x52   :  { %127 = vrsqrt.f32 %v80_v27 }
  0x5c   :  { %v128_v32 = vpop.eup %127 }
  0x5d   :  { %v83_v33 = vmul.f32 %v128_v32, %v82_v30 }
  0x5f   :  { %v85_v35 = vmul.f32 %v83_v33, %v75_v22  ;;  %v90_v36 = vrot.slane %v83_v33, %v89_v31 }
  0x61   :  { %v86_v37 = vsub.f32 %v84_v34, %v85_v35  ;;  %v91_v38 = vmul.f32 %v90_v36, %v52_v0  ;;  %v92_v39 = vmul.f32 %v90_v36, %v53_v1 }
  0x63   :  { %v97_v40 = vrot.slane %v86_v37, %v89_v31 }
  0x65   :  { %v99_v41 = vadd.f32 %v97_v40, %v91_v38  ;;  %v100_v42 = vadd.f32 %v97_v40, %v92_v39 }
  0x67   :  { %101 = vst.msk [vmem:[#allocation8] sm:$0xff] %vm54_vm0, %v99_v41  ;;  %102 = vst.msk [vmem:[#allocation8 + $0x8] sm:$0xff] %vm54_vm0, %v100_v42 }
  0x68   :  { %206 = shalt.err (!%p203_p0)
}
  0x69   :  { %s207_s27 = scalar_lea.hbm %s319_s3, 256 }
  0x6a   :  { %p208_p1 = scmp.ne.s32.totalorder %s319_s3, %s207_s27  ;;  %p211_p2 = scmp.lt.u32.totalorder %s207_s27, %s319_s3 }
  0x6c   :  { %p213_p3 = pnand %p211_p2, %p208_p1 }
  0x6e   :  { %216 = shalt.err (!%p213_p3)
}
  0x6f   :  { %114 = dma.vmem_to_hbm [thread:$0]  %s109_s23, 256, %s319_s3, [#allocation4], %s225_s1, %s225_s1, %s226_s8  }
  0x70   :  { %221 = dma.done.wait [#allocation4], 256  }
  0x71   :  { %222 = vsyncadd [#allocation4], 4294967040 }
  0x72   :  { %118 = vsyncpa [#allocation3], 1 }
  0x73   :  { %119 = vsyncpa [#allocation6], 1 }
  0x74   :  { %120 = vsyncpa [#allocation4], 1 }

</bundles_post_ra>
